<compile_context>
chip_gen: v5e
topology: v5e:2x2
jax: 0.10.0
libtpu: 0.0.40
codegen_flags: <defaults>
</compile_context>

<pallas_src>
import math

import jax
import jax.numpy as jnp
from jax.experimental import pallas as pl
from jax.experimental.pallas import tpu as pltpu


def expand_feature_embeddings(
    feature_embeddings, *, features_per_timestep, features_per_token
):
    """Fold the leading-zero pad + token grouping into an expanded weight.

    Returns W_expanded:(features_per_timestep, tokens_per_timestep*d_model)
    such that  x.reshape(B*T, F) @ W_expanded  equals the reference
    (padded + grouped) matmul, flattened over tokens.  Parameter-only
    transform: build once, reuse across forward calls.
    """
    F = features_per_timestep
    fpt = features_per_token
    d_model = feature_embeddings.shape[1]
    tpt = math.ceil((F + 1) / fpt)

    w = feature_embeddings.astype(jnp.float32)
    # Padded position of input feature f is p = f + 1 (position 0 is the zero pad).
    p = jnp.arange(F) + 1
    tok = p // fpt  # which token within the timestep
    k = p % fpt     # which row of the original (fpt, d_model) weight
    we = jnp.zeros((F, tpt, d_model), dtype=jnp.float32)
    we = we.at[jnp.arange(F), tok].set(w[k])
    return we.reshape(F, tpt * d_model)


def _tokenizer_matmul_kernel(a_ref, w_ref, o_ref):
    # (tm, K) @ (K, N) -> (tm, N) with f32 accumulation.  K is tiny, so the
    # kernel is HBM-bound; one MXU pass per tile keeps lowering simple.
    o_ref[...] = jnp.dot(
        a_ref[...], w_ref[...], preferred_element_type=jnp.float32
    ).astype(o_ref.dtype)


def _pick_block_m(M, cap=1024):
    """Row tile: as big as possible (amortizes ~0.35us/grid-step overhead)."""
    if M > cap:
        return cap  # multiple of 8; remainder tile handled by blocked specs
    # Medium M: two multiple-of-8 tiles so megacore can shard the grid.
    if M >= 512 and M % 16 == 0:
        return M // 2
    return M  # full-M block is always a legal block shape


def traffic_flow_tokenizer_forward(
    x,
    feature_embeddings,
    *,
    num_timesteps,
    features_per_timestep,
    features_per_token,
    expanded_weight=None,
):
    batch = x.shape[0]
    d_model = feature_embeddings.shape[1]
    tpt = math.ceil((features_per_timestep + 1) / features_per_token)

    if expanded_weight is None:
        expanded_weight = expand_feature_embeddings(
            feature_embeddings,
            features_per_timestep=features_per_timestep,
            features_per_token=features_per_token,
        )

    # Contiguous, pad-free A operand: each row is one timestep's raw features.
    a = x.reshape(batch * num_timesteps, features_per_timestep).astype(jnp.float32)

    M, K = a.shape
    N = tpt * d_model

    tm = _pick_block_m(M)
    grid_m = pl.cdiv(M, tm)

    # VMEM budget: double-buffered A tile, resident weight, output tile + headroom.
    vmem_need = 4 * 2 * (tm * K + K * N + tm * N) + (4 << 20)
    vmem_limit = int(min(max(vmem_need, 32 << 20), 48 << 20))

    out_flat = pl.pallas_call(
        _tokenizer_matmul_kernel,
        out_shape=jax.ShapeDtypeStruct((M, N), jnp.float32),
        grid_spec=pltpu.PrefetchScalarGridSpec(
            num_scalar_prefetch=0,
            grid=(grid_m,),
            in_specs=[
                pl.BlockSpec((tm, K), lambda i: (i, 0)),  # contiguous rows of x
                pl.BlockSpec((K, N), lambda i: (0, 0)),   # expanded weight, resident
            ],
            out_specs=pl.BlockSpec((tm, N), lambda i: (i, 0)),
        ),
        compiler_params=pltpu.CompilerParams(
            dimension_semantics=("parallel",),
            vmem_limit_bytes=vmem_limit,
        ),
    )(a, expanded_weight)

    # Free view back to the module's output layout.
    return out_flat.reshape(batch, num_timesteps * tpt, d_model)


if __name__ == "__main__":
    # Small shapes consistent with the module.
    batch = 2
    num_timesteps = 8
    features_per_timestep = 5
    features_per_token = 3
    d_model = 32
    state_dim = num_timesteps * features_per_timestep  # 40
    tokens_per_timestep = math.ceil((features_per_timestep + 1) / features_per_token)

    key = jax.random.PRNGKey(0)
    kx, kw = jax.random.split(key)
    x = jax.random.normal(kx, (batch, state_dim), dtype=jnp.float32)
    # Deterministic parameter init (stand-in for torch.randn).
    feature_embeddings = jax.random.normal(
        kw, (features_per_token, d_model), dtype=jnp.float32
    )

    # Build the pad-folded weight once (parameter-only transform).
    w_expanded = jax.block_until_ready(
        expand_feature_embeddings(
            feature_embeddings,
            features_per_timestep=features_per_timestep,
            features_per_token=features_per_token,
        )
    )

    fwd = jax.jit(
        lambda xx, we: traffic_flow_tokenizer_forward(
            xx,
            feature_embeddings,
            num_timesteps=num_timesteps,
            features_per_timestep=features_per_timestep,
            features_per_token=features_per_token,
            expanded_weight=we,
        )
    )
    out = jax.block_until_ready(fwd(x, w_expanded))

    # Pure-JAX reference check (same semantics as the PyTorch forward).
    x3 = x.reshape(batch, num_timesteps, features_per_timestep)
    ref_pad = jnp.zeros(
        (batch, num_timesteps, tokens_per_timestep * features_per_token),
        dtype=jnp.float32,
    )
    ref_pad = ref_pad.at[:, :, 1 : features_per_timestep + 1].set(x3)
    ref = ref_pad.reshape(
        batch, num_timesteps * tokens_per_timestep, features_per_token
    ) @ feature_embeddings

    assert out.shape == (batch, num_timesteps * tokens_per_timestep, d_model)
    assert jnp.allclose(out, ref, atol=1e-5, rtol=1e-5)
    print("KERNEL_OK")
</pallas_src>

<mosaic_0001>
module attributes {stable_mosaic.version = 11 : i64} {
  func.func @_tokenizer_matmul_kernel(%arg0: i32, %arg1: memref<16x5xf32, #tpu.memory_space<vmem>>, %arg2: memref<5x64xf32, #tpu.memory_space<vmem>>, %arg3: memref<16x64xf32, #tpu.memory_space<vmem>>) attributes {dimension_semantics = [#tpu.dimension_semantics<parallel>], iteration_bounds = array<i64: 1>, scalar_prefetch = 0 : i64, scratch_operands = 0 : i64, tpu.core_type = #tpu.core_type<tc>, window_params = [{transform_indices = @transform_0, window_bounds = array<i64: 16, 5>}, {pipeline_mode = #tpu.pipeline_mode<synchronous>, transform_indices = @transform_1, window_bounds = array<i64: 5, 64>}, {transform_indices = @transform_2, window_bounds = array<i64: 16, 64>}]} {
    %c0 = arith.constant 0 : index
    %c0_0 = arith.constant 0 : index
    %0 = vector.load %arg1[%c0, %c0_0] : memref<16x5xf32, #tpu.memory_space<vmem>>, vector<16x5xf32>
    %c0_1 = arith.constant 0 : index
    %c0_2 = arith.constant 0 : index
    %1 = vector.load %arg2[%c0_1, %c0_2] : memref<5x64xf32, #tpu.memory_space<vmem>>, vector<5x64xf32>
    %cst = arith.constant dense<0.000000e+00> : vector<16x64xf32>
    %2 = tpu.matmul %0, %1, %cst {dimension_numbers = #tpu.dot_dimension_numbers<[1], [0], [0], [1], [0, 0, 1, 1], [], []>} : vector<16x5xf32>, vector<5x64xf32>, vector<16x64xf32> -> vector<16x64xf32>
    %c0_3 = arith.constant 0 : index
    %c0_4 = arith.constant 0 : index
    %3 = vector.load %arg3[%c0_3, %c0_4] : memref<16x64xf32, #tpu.memory_space<vmem>>, vector<16x64xf32>
    tpu.vector_store %arg3[%c0_3, %c0_4], %2 {strides = array<i32>} : memref<16x64xf32, #tpu.memory_space<vmem>>, vector<16x64xf32>,
    return
  }
  func.func @transform_0(%arg0: i32) -> (i32, i32) {
    %c0_i32 = arith.constant 0 : i32
    %c0_i32_0 = arith.constant 0 : i32
    return %arg0, %c0_i32 : i32, i32
  }
  func.func @transform_1(%arg0: i32) -> (i32, i32) {
    %c0_i32 = arith.constant 0 : i32
    %c0_i32_0 = arith.constant 0 : i32
    %c0_i32_1 = arith.constant 0 : i32
    return %c0_i32, %c0_i32_0 : i32, i32
  }
  func.func @transform_2(%arg0: i32) -> (i32, i32) {
    %c0_i32 = arith.constant 0 : i32
    %c0_i32_0 = arith.constant 0 : i32
    return %arg0, %c0_i32 : i32, i32
  }
}

</mosaic_0001>

<bundles_post_ra>
// kernel: _lambda_.1
= control target key start
LH: loop header
LB: loop body
LE: loop exit
PB: predicated region body
PF: predicated region fallthrough
CT: control target
= control target key end

     0   :  { %vm21_vm0 = vcmask 1044480   ;;  %vm14_vm1 = vcmask 39936   ;;  %vm48_vm2 = vcmask 523264   ;;  %s89_s1 = inlined_call_operand.vmem [shape: f32[5,64], index: 1, kind: input, shape index: {}]   ;;  %s90_s0 = inlined_call_operand.vmem [shape: f32[16,5], index: 0, kind: input, shape index: {}]   ;;  %s91_s2 = inlined_call_operand.vmem [shape: f32[16,64], index: 2, kind: output, shape index: {}]  }
   0x1   :  { %v13_v0 = vld [vmem:[%s89_s1] sm:$0x1f]  ;;  %v12_v2 = vld [vmem:[%s90_s0 + $0x8] sm:$0xff] }
   0x2   :  { %v11_v1 = vld [vmem:[%s90_s0] sm:$0xff]  ;;  %55 = vmatpush.msk.msra.mxu0 %vm21_vm0, %v13_v0  ;;  %58 = vmatpush.msk.msra.mxu1 %vm21_vm0, %v13_v0 }
   0x3   :  { %56 = vmatmul.msk.f32.vlgmr.msra.gmra.mxu0 %vm14_vm1, %v11_v1  ;;  %57 = vmatmul.msk.f32.vlgmr.msra.gmra.mxu1 %vm14_vm1, %v12_v2 }
  0x80   :  { %v42_v3 = vpop.f32.mrf.mxu0  ;;  %v45_v4 = vpop.f32.mrf.mxu1 }
  0x81   :  { %49 = vst.msk [vmem:[%s91_s2] sm:$0xff] %vm48_vm2, %v42_v3 }
  0x82   :  { %50 = vst.msk [vmem:[%s91_s2 + $0x8] sm:$0xff] %vm48_vm2, %v45_v4 }

</bundles_post_ra>
